<compile_context>
chip_gen: v7x
topology: tpu7x:2x2x1
jax: 0.10.0
libtpu: 0.0.40
codegen_flags: <defaults>
</compile_context>

<pallas_src>
import functools

import jax
import jax.numpy as jnp
from jax.experimental import pallas as pl
from jax.experimental.pallas import tpu as pltpu

# ----------------------------- sizes -----------------------------------------
B_TEST = 8                # small test batch
D = 128                   # vl_dim == head.in_features
H1, H2, H3 = 5, 44, 156   # hardcoded head output widths
D2 = D + H1               # 133 = head2.in_features
D3 = D2 + H2              # 177 = head3.in_features
O1_OFF = H2               # 44  : o1 lanes inside the 128-wide "tail" block
O3_OFF = 100              # o3 occupies lanes 100:256 of the 256-wide block
OUT_W = 2 * D             # 256 : packed lane-dense output width
# packed bf16 weight-slab column offsets (contraction K = 128 rows everywhere)
C_S1, C_S2X, C_S3X, C_S2C, C_S3C, WS_W = 0, 128, 256, 512, 640, 896
EPS = 1e-5


# ----------------------------- Pallas kernel ---------------------------------
def classification_head_kernel(src_ref, ws_ref, p_ref, out_ref):
  f32 = jnp.float32
  bf16 = jnp.bfloat16
  x = src_ref[...].astype(f32)                       # (TB, 128), f32 for stats
  xb = src_ref[...].astype(bf16)                     # shared MXU operand

  # --- ONE stage-independent MXU dot: K=128, N=512 ---------------------------
  #   cols   0:128 -> x @ (g1     * W1      )  (o1 at lanes 44:49)
  #   cols 128:256 -> x @ (g2[:128]* W2[:128])  (o2 at lanes  0:44)
  #   cols 256:512 -> x @ (g3[:128]* W3[:128])  (o3 at lanes 100:256)
  p_all = jnp.dot(xb, ws_ref[:, C_S1:C_S2C], preferred_element_type=f32)

  # --- stage 1 : LN(x) -> Linear(128 -> 5) -----------------------------------
  s1 = jnp.sum(x, -1, keepdims=True)
  q1 = jnp.sum(x * x, -1, keepdims=True)
  m1 = s1 * (1.0 / D)
  inv1 = jax.lax.rsqrt(q1 * (1.0 / D) - m1 * m1 + EPS)   # one-pass var, f32
  gw1 = p_ref[0:1, 0:D]
  c1 = p_ref[1:2, 0:D]
  r1 = inv1 * (p_all[:, C_S1:C_S2X] - m1 * gw1) + c1      # o1 @ 44:49, pads = 0

  # --- stage 2 : LN(cat[x, o1]) -> Linear(133 -> 44) -------------------------
  # pad lanes of r1 are exact zeros, so padded 128-lane sums == true concat sums
  s2 = s1 + jnp.sum(r1, -1, keepdims=True)
  q2 = q1 + jnp.sum(r1 * r1, -1, keepdims=True)
  m2 = s2 * (1.0 / D2)
  inv2 = jax.lax.rsqrt(q2 * (1.0 / D2) - m2 * m2 + EPS)
  corr2 = jnp.dot(r1.astype(bf16), ws_ref[:, C_S2C:C_S3C],
                  preferred_element_type=f32)             # o1-dependent K=128 dot
  gw2 = p_ref[0:1, D:2 * D]
  c2 = p_ref[1:2, D:2 * D]
  r2 = inv2 * (p_all[:, C_S2X:C_S3X] + corr2 - m2 * gw2) + c2   # o2 @ 0:44

  # --- stage 3 : LN(cat[x, o1, o2]) -> Linear(177 -> 156) --------------------
  s3 = s2 + jnp.sum(r2, -1, keepdims=True)
  q3 = q2 + jnp.sum(r2 * r2, -1, keepdims=True)
  m3 = s3 * (1.0 / D3)
  inv3 = jax.lax.rsqrt(q3 * (1.0 / D3) - m3 * m3 + EPS)
  tail = r1 + r2                                          # o2 @ 0:44, o1 @ 44:49
  corr3 = jnp.dot(tail.astype(bf16), ws_ref[:, C_S3C:WS_W],
                  preferred_element_type=f32)             # (TB, 256)
  gw3 = p_ref[2:3, :]
  c3 = p_ref[3:4, :]
  r3 = inv3 * (p_all[:, C_S3X:C_S2C] + corr3 - m3 * gw3) + c3   # o3 @ 100:256

  # Packed lane-dense output: two aligned, unmasked 128-wide slice stores
  # (no concat copy).  r3[:, 0:100] and tail[:, 49:128] are exact zeros, so
  # the halves never overlap: o2 @ 0:44, o1 @ 44:49, o3 @ 100:256.
  out_ref[:, 0:D] = tail + r3[:, 0:D]
  out_ref[:, D:OUT_W] = r3[:, D:OUT_W]


# ----------------------------- wrapper ----------------------------------------
def _auto_block_b(b):
  """Rows per grid step: big tiles amortize the ~0.35us/step overhead, but keep
  >=2 grid steps once b>=16 so v7x's two TensorCores both get work.  The 512
  cap keeps double-buffered tiles well under v5e's 16 MiB scoped-VMEM default."""
  cap = 512 if b < 16 else min(512, b // 2)
  for cand in (512, 256, 128, 64, 32, 16, 8):
    if cand <= cap and b % cand == 0:
      return cand
  return 8


@functools.partial(jax.jit, static_argnames=("block_b",))
def classification_head_forward(src, w_slab, p_slab, *, block_b=None):
  b = src.shape[0]
  assert b % 8 == 0, "batch must be a multiple of 8 (sublane packing)"
  bb = block_b if block_b is not None else _auto_block_b(b)
  assert b % bb == 0 and bb % 8 == 0

  cost = pl.CostEstimate(
      flops=2 * b * D * WS_W,                 # 1 big dot + 2 correction dots
      transcendentals=3 * b,                  # one rsqrt per row per stage
      bytes_accessed=(src.size * src.dtype.itemsize
                      + w_slab.size * w_slab.dtype.itemsize
                      + p_slab.size * p_slab.dtype.itemsize
                      + b * OUT_W * 4),
  )
  out = pl.pallas_call(
      classification_head_kernel,
      out_shape=jax.ShapeDtypeStruct((b, OUT_W), jnp.float32),
      grid=(b // bb,),
      in_specs=[
          pl.BlockSpec((bb, D), lambda i: (i, 0)),        # src rows
          pl.BlockSpec(w_slab.shape, lambda i: (0, 0)),   # packed bf16 weights
          pl.BlockSpec(p_slab.shape, lambda i: (0, 0)),   # packed f32 vec params
      ],
      out_specs=pl.BlockSpec((bb, OUT_W), lambda i: (i, 0)),
      compiler_params=pltpu.CompilerParams(
          dimension_semantics=("parallel",)),
      cost_estimate=cost,
  )(src, w_slab, p_slab)
  o1 = out[:, O1_OFF:O1_OFF + H1]
  o2 = out[:, 0:H2]
  o3 = out[:, O3_OFF:O3_OFF + H3]
  return o1, o2, o3


# ----------------------------- parameter packing ------------------------------
def init_params(key, *, w_std=0.02):
  """torch-layout params: Linear weights are (out, in); LN affine over the cat.

  Note: the real module uses trunc_normal std=2e-5 for head weights; that makes
  a numerical comparison meaningless (outputs ~1e-4 pass any atol), so the test
  uses a realistic scale.  The forward math is identical either way."""
  ks = jax.random.split(key, 12)
  f32 = jnp.float32

  def n(k, shape, std):
    return (std * jax.random.normal(k, shape)).astype(f32)

  return dict(
      w1=n(ks[0], (H1, D), w_std), b1=n(ks[1], (H1,), 0.02),
      w2=n(ks[2], (H2, D2), w_std), b2=n(ks[3], (H2,), 0.02),
      w3=n(ks[4], (H3, D3), w_std), b3=n(ks[5], (H3,), 0.02),
      g1=1.0 + n(ks[6], (D,), 0.1), be1=n(ks[7], (D,), 0.05),
      g2=1.0 + n(ks[8], (D2,), 0.1), be2=n(ks[9], (D2,), 0.05),
      g3=1.0 + n(ks[10], (D3,), 0.1), be3=n(ks[11], (D3,), 0.05),
  )


def _assert_zero(a):
  assert float(jnp.max(jnp.abs(a))) == 0.0, "pad region must be exactly zero"


def pack_params(p):
  """Fold LN gammas into the transposed Linear weights and pack everything into
  one bf16 (128, 896) weight slab + one f32 (8, 256) vector slab.

  Weight-slab columns (contraction K = 128 rows everywhere):
      [  0:128)  g1        * W1        -> o1 at output lanes 44:49
      [128:256)  g2[:128]  * W2[:128]  -> o2 at output lanes  0:44
      [256:512)  g3[:128]  * W3[:128]  -> o3 at output lanes 100:256
      [512:640)  g2[128:]  * W2[128:]  rows at 44:49          (LHS = r1)
      [640:896)  g3 o2/o1  rows at 0:44 / 44:49               (LHS = tail)
  Vector-slab rows (f32, 256 wide):
      row 0: g1@W1 at 44:49   | g2@W2 at 128:172
      row 1: be1@W1+b1        | be2@W2+b2
      row 2: g3@W3 at 100:256
      row 3: be3@W3+b3 at 100:256
  The packed-concat algebra in the kernel relies on every pad lane being an
  exact zero -- asserted below."""
  f32 = jnp.float32
  w1t, w2t, w3t = p["w1"].T, p["w2"].T, p["w3"].T        # (K, out)
  g1, g2, g3 = p["g1"], p["g2"], p["g3"]
  be1, be2, be3 = p["be1"], p["be2"], p["be3"]

  ws = jnp.zeros((D, WS_W), f32)
  ws = ws.at[:, C_S1 + O1_OFF:C_S1 + O1_OFF + H1].set(g1[:, None] * w1t)
  ws = ws.at[:, C_S2X:C_S2X + H2].set(g2[:D, None] * w2t[:D])
  ws = ws.at[:, C_S3X + O3_OFF:C_S3X + O3_OFF + H3].set(g3[:D, None] * w3t[:D])
  ws = ws.at[O1_OFF:O1_OFF + H1, C_S2C:C_S2C + H2].set(g2[D:D2, None] * w2t[D:D2])
  ws = ws.at[0:H2, C_S3C + O3_OFF:C_S3C + O3_OFF + H3].set(
      g3[D2:D3, None] * w3t[D2:D3])                      # o2 rows
  ws = ws.at[O1_OFF:O1_OFF + H1, C_S3C + O3_OFF:C_S3C + O3_OFF + H3].set(
      g3[D:D2, None] * w3t[D:D2])                        # o1 rows

  # exact-f32 pack-time reductions (tiny dims; avoids default-precision matmul)
  gw1 = jnp.sum(g1[:, None] * w1t, axis=0)
  gw2 = jnp.sum(g2[:, None] * w2t, axis=0)
  gw3 = jnp.sum(g3[:, None] * w3t, axis=0)
  c1 = jnp.sum(be1[:, None] * w1t, axis=0) + p["b1"]
  c2 = jnp.sum(be2[:, None] * w2t, axis=0) + p["b2"]
  c3 = jnp.sum(be3[:, None] * w3t, axis=0) + p["b3"]

  pv = jnp.zeros((8, OUT_W), f32)
  pv = pv.at[0, O1_OFF:O1_OFF + H1].set(gw1)
  pv = pv.at[0, D:D + H2].set(gw2)
  pv = pv.at[1, O1_OFF:O1_OFF + H1].set(c1)
  pv = pv.at[1, D:D + H2].set(c2)
  pv = pv.at[2, O3_OFF:O3_OFF + H3].set(gw3)
  pv = pv.at[3, O3_OFF:O3_OFF + H3].set(c3)

  # Pad-lane guards: the kernel's padded LN sums and the non-overlapping output
  # packing silently break if any of these stop being exact zeros.
  _assert_zero(ws[:, 0:O1_OFF])                          # stage-1 cols < 44
  _assert_zero(ws[:, O1_OFF + H1:C_S2X])                 # stage-1 cols 49:128
  _assert_zero(ws[:, C_S2X + H2:C_S3X])                  # stage-2 x cols 44:128
  _assert_zero(ws[:, C_S3X:C_S3X + O3_OFF])              # stage-3 x cols < 100
  _assert_zero(ws[:, C_S2C + H2:C_S3C])                  # corr2 cols 44:128
  _assert_zero(ws[O1_OFF + H1:, C_S2C:C_S3C])            # corr2 rows 49:128
  _assert_zero(ws[:, C_S3C:C_S3C + O3_OFF])              # corr3 cols < 100
  _assert_zero(ws[O1_OFF + H1:, C_S3C:])                 # corr3 rows 49:128
  _assert_zero(pv[0:2, 0:O1_OFF])
  _assert_zero(pv[0:2, O1_OFF + H1:D])
  _assert_zero(pv[0:2, D + H2:])
  _assert_zero(pv[2:4, 0:O3_OFF])
  _assert_zero(pv[4:])

  return ws.astype(jnp.bfloat16), pv


# ----------------------------- pure-JAX reference -----------------------------
def reference_forward(src, p):
  hp = jax.lax.Precision.HIGHEST

  def ln(x, g, b):
    m = jnp.mean(x, -1, keepdims=True)
    v = jnp.mean((x - m) ** 2, -1, keepdims=True)
    return (x - m) / jnp.sqrt(v + EPS) * g + b

  o1 = jnp.dot(ln(src, p["g1"], p["be1"]), p["w1"].T, precision=hp) + p["b1"]
  x2 = jnp.concatenate([src, o1], -1)
  o2 = jnp.dot(ln(x2, p["g2"], p["be2"]), p["w2"].T, precision=hp) + p["b2"]
  x3 = jnp.concatenate([x2, o2], -1)
  o3 = jnp.dot(ln(x3, p["g3"], p["be3"]), p["w3"].T, precision=hp) + p["b3"]
  return o1, o2, o3


# ----------------------------- main -------------------------------------------
if __name__ == "__main__":
  key = jax.random.PRNGKey(0)
  k_src, k_p = jax.random.split(key)
  params = init_params(k_p)
  w_slab, p_slab = pack_params(params)

  def check(got, ref):
    # rtol-style check vs the HIGHEST-precision f32 reference: the bf16 MXU
    # path gives ~1e-3 abs error at these O(0.1-1) magnitudes; packing/algebra
    # bugs give O(0.1-1) errors, so 2e-2 * max|ref| separates them cleanly.
    assert got.shape == ref.shape
    err = float(jnp.max(jnp.abs(got - ref)))
    tol = 2e-2 * max(float(jnp.max(jnp.abs(ref))), 1.0)
    assert err <= tol, (err, tol)

  for b in (B_TEST, 32):        # b=32 exercises the multi-step (2-TC-ready) grid
    src = jax.random.normal(jax.random.fold_in(k_src, b), (b, D), jnp.float32)
    o1, o2, o3 = classification_head_forward(src, w_slab, p_slab)
    jax.block_until_ready((o1, o2, o3))
    r1, r2, r3 = reference_forward(src, params)
    assert o1.shape == (b, H1) and o2.shape == (b, H2) and o3.shape == (b, H3)
    check(o1, r1)
    check(o2, r2)
    check(o3, r3)

  print("KERNEL_OK")
</pallas_src>

<mosaic_0001>
module attributes {stable_mosaic.version = 11 : i64} {
  func.func @classification_head_kernel(%arg0: i32, %arg1: memref<8x128xf32, #tpu.memory_space<vmem>>, %arg2: memref<128x896xbf16, #tpu.memory_space<vmem>>, %arg3: memref<8x256xf32, #tpu.memory_space<vmem>>, %arg4: memref<8x256xf32, #tpu.memory_space<vmem>>) attributes {dimension_semantics = [#tpu.dimension_semantics<parallel>], iteration_bounds = array<i64: 1>, scalar_prefetch = 0 : i64, scratch_operands = 0 : i64, tpu.core_type = #tpu.core_type<tc>, window_params = [{transform_indices = @transform_0, window_bounds = array<i64: 8, 128>}, {pipeline_mode = #tpu.pipeline_mode<synchronous>, transform_indices = @transform_1, window_bounds = array<i64: 128, 896>}, {pipeline_mode = #tpu.pipeline_mode<synchronous>, transform_indices = @transform_2, window_bounds = array<i64: 8, 256>}, {transform_indices = @transform_3, window_bounds = array<i64: 8, 256>}]} {
    %c0 = arith.constant 0 : index
    %c0_0 = arith.constant 0 : index
    %0 = vector.load %arg1[%c0, %c0_0] : memref<8x128xf32, #tpu.memory_space<vmem>>, vector<8x128xf32>
    %c0_1 = arith.constant 0 : index
    %c0_2 = arith.constant 0 : index
    %1 = vector.load %arg1[%c0_1, %c0_2] : memref<8x128xf32, #tpu.memory_space<vmem>>, vector<8x128xf32>
    %2 = arith.truncf %1 : vector<8x128xf32> to vector<8x128xbf16>
    %c0_3 = arith.constant 0 : index
    %c0_4 = arith.constant 0 : index
    %3 = vector.load %arg2[%c0_3, %c0_4] : memref<128x896xbf16, #tpu.memory_space<vmem>>, vector<128x512xbf16>
    %cst = arith.constant dense<0.000000e+00> : vector<8x512xf32>
    %4 = tpu.matmul %2, %3, %cst {dimension_numbers = #tpu.dot_dimension_numbers<[1], [0], [0], [1], [0, 0, 1, 1], [], []>} : vector<8x128xbf16>, vector<128x512xbf16>, vector<8x512xf32> -> vector<8x512xf32>
    %cst_5 = arith.constant dense<0.000000e+00> : vector<8xf32>
    %5 = vector.multi_reduction <add>, %0, %cst_5 [1] : vector<8x128xf32> to vector<8xf32>
    %6 = vector.shape_cast %5 : vector<8xf32> to vector<8x1xf32>
    %7 = arith.mulf %0, %0 : vector<8x128xf32>
    %cst_6 = arith.constant dense<0.000000e+00> : vector<8xf32>
    %8 = vector.multi_reduction <add>, %7, %cst_6 [1] : vector<8x128xf32> to vector<8xf32>
    %9 = vector.shape_cast %8 : vector<8xf32> to vector<8x1xf32>
    %cst_7 = arith.constant 7.812500e-03 : f32
    %10 = vector.broadcast %cst_7 : f32 to vector<8x1xf32>
    %11 = arith.mulf %6, %10 : vector<8x1xf32>
    %cst_8 = arith.constant 7.812500e-03 : f32
    %12 = vector.broadcast %cst_8 : f32 to vector<8x1xf32>
    %13 = arith.mulf %9, %12 : vector<8x1xf32>
    %14 = arith.mulf %11, %11 : vector<8x1xf32>
    %15 = arith.subf %13, %14 : vector<8x1xf32>
    %cst_9 = arith.constant 9.99999974E-6 : f32
    %16 = vector.broadcast %cst_9 : f32 to vector<8x1xf32>
    %17 = arith.addf %15, %16 : vector<8x1xf32>
    %18 = math.rsqrt %17 : vector<8x1xf32>
    %c0_10 = arith.constant 0 : index
    %c0_11 = arith.constant 0 : index
    %19 = vector.load %arg3[%c0_10, %c0_11] : memref<8x256xf32, #tpu.memory_space<vmem>>, vector<1x128xf32>
    %c1 = arith.constant 1 : index
    %c0_12 = arith.constant 0 : index
    %20 = vector.load %arg3[%c1, %c0_12] : memref<8x256xf32, #tpu.memory_space<vmem>>, vector<1x128xf32>
    %21 = vector.extract_strided_slice %4 {offsets = [0, 0], sizes = [8, 128], strides = [1, 1]} : vector<8x512xf32> to vector<8x128xf32>
    %22 = vector.broadcast %11 : vector<8x1xf32> to vector<8x128xf32>
    %23 = vector.broadcast %19 : vector<1x128xf32> to vector<8x128xf32>
    %24 = arith.mulf %22, %23 : vector<8x128xf32>
    %25 = arith.subf %21, %24 : vector<8x128xf32>
    %26 = vector.broadcast %18 : vector<8x1xf32> to vector<8x128xf32>
    %27 = arith.mulf %26, %25 : vector<8x128xf32>
    %28 = vector.broadcast %20 : vector<1x128xf32> to vector<8x128xf32>
    %29 = arith.addf %27, %28 : vector<8x128xf32>
    %cst_13 = arith.constant dense<0.000000e+00> : vector<8xf32>
    %30 = vector.multi_reduction <add>, %29, %cst_13 [1] : vector<8x128xf32> to vector<8xf32>
    %31 = vector.shape_cast %30 : vector<8xf32> to vector<8x1xf32>
    %32 = arith.addf %6, %31 : vector<8x1xf32>
    %33 = arith.mulf %29, %29 : vector<8x128xf32>
    %cst_14 = arith.constant dense<0.000000e+00> : vector<8xf32>
    %34 = vector.multi_reduction <add>, %33, %cst_14 [1] : vector<8x128xf32> to vector<8xf32>
    %35 = vector.shape_cast %34 : vector<8xf32> to vector<8x1xf32>
    %36 = arith.addf %9, %35 : vector<8x1xf32>
    %cst_15 = arith.constant 0.00751879718 : f32
    %37 = vector.broadcast %cst_15 : f32 to vector<8x1xf32>
    %38 = arith.mulf %32, %37 : vector<8x1xf32>
    %cst_16 = arith.constant 0.00751879718 : f32
    %39 = vector.broadcast %cst_16 : f32 to vector<8x1xf32>
    %40 = arith.mulf %36, %39 : vector<8x1xf32>
    %41 = arith.mulf %38, %38 : vector<8x1xf32>
    %42 = arith.subf %40, %41 : vector<8x1xf32>
    %cst_17 = arith.constant 9.99999974E-6 : f32
    %43 = vector.broadcast %cst_17 : f32 to vector<8x1xf32>
    %44 = arith.addf %42, %43 : vector<8x1xf32>
    %45 = math.rsqrt %44 : vector<8x1xf32>
    %46 = arith.truncf %29 : vector<8x128xf32> to vector<8x128xbf16>
    %c0_18 = arith.constant 0 : index
    %c512 = arith.constant 512 : index
    %47 = vector.load %arg2[%c0_18, %c512] : memref<128x896xbf16, #tpu.memory_space<vmem>>, vector<128x128xbf16>
    %cst_19 = arith.constant dense<0.000000e+00> : vector<8x128xf32>
    %48 = tpu.matmul %46, %47, %cst_19 {dimension_numbers = #tpu.dot_dimension_numbers<[1], [0], [0], [1], [0, 0, 1, 1], [], []>} : vector<8x128xbf16>, vector<128x128xbf16>, vector<8x128xf32> -> vector<8x128xf32>
    %c0_20 = arith.constant 0 : index
    %c128 = arith.constant 128 : index
    %49 = vector.load %arg3[%c0_20, %c128] : memref<8x256xf32, #tpu.memory_space<vmem>>, vector<1x128xf32>
    %c1_21 = arith.constant 1 : index
    %c128_22 = arith.constant 128 : index
    %50 = vector.load %arg3[%c1_21, %c128_22] : memref<8x256xf32, #tpu.memory_space<vmem>>, vector<1x128xf32>
    %51 = vector.extract_strided_slice %4 {offsets = [0, 128], sizes = [8, 128], strides = [1, 1]} : vector<8x512xf32> to vector<8x128xf32>
    %52 = arith.addf %51, %48 : vector<8x128xf32>
    %53 = vector.broadcast %38 : vector<8x1xf32> to vector<8x128xf32>
    %54 = vector.broadcast %49 : vector<1x128xf32> to vector<8x128xf32>
    %55 = arith.mulf %53, %54 : vector<8x128xf32>
    %56 = arith.subf %52, %55 : vector<8x128xf32>
    %57 = vector.broadcast %45 : vector<8x1xf32> to vector<8x128xf32>
    %58 = arith.mulf %57, %56 : vector<8x128xf32>
    %59 = vector.broadcast %50 : vector<1x128xf32> to vector<8x128xf32>
    %60 = arith.addf %58, %59 : vector<8x128xf32>
    %cst_23 = arith.constant dense<0.000000e+00> : vector<8xf32>
    %61 = vector.multi_reduction <add>, %60, %cst_23 [1] : vector<8x128xf32> to vector<8xf32>
    %62 = vector.shape_cast %61 : vector<8xf32> to vector<8x1xf32>
    %63 = arith.addf %32, %62 : vector<8x1xf32>
    %64 = arith.mulf %60, %60 : vector<8x128xf32>
    %cst_24 = arith.constant dense<0.000000e+00> : vector<8xf32>
    %65 = vector.multi_reduction <add>, %64, %cst_24 [1] : vector<8x128xf32> to vector<8xf32>
    %66 = vector.shape_cast %65 : vector<8xf32> to vector<8x1xf32>
    %67 = arith.addf %36, %66 : vector<8x1xf32>
    %cst_25 = arith.constant 0.00564971752 : f32
    %68 = vector.broadcast %cst_25 : f32 to vector<8x1xf32>
    %69 = arith.mulf %63, %68 : vector<8x1xf32>
    %cst_26 = arith.constant 0.00564971752 : f32
    %70 = vector.broadcast %cst_26 : f32 to vector<8x1xf32>
    %71 = arith.mulf %67, %70 : vector<8x1xf32>
    %72 = arith.mulf %69, %69 : vector<8x1xf32>
    %73 = arith.subf %71, %72 : vector<8x1xf32>
    %cst_27 = arith.constant 9.99999974E-6 : f32
    %74 = vector.broadcast %cst_27 : f32 to vector<8x1xf32>
    %75 = arith.addf %73, %74 : vector<8x1xf32>
    %76 = math.rsqrt %75 : vector<8x1xf32>
    %77 = arith.addf %29, %60 : vector<8x128xf32>
    %78 = arith.truncf %77 : vector<8x128xf32> to vector<8x128xbf16>
    %c0_28 = arith.constant 0 : index
    %c640 = arith.constant 640 : index
    %79 = vector.load %arg2[%c0_28, %c640] : memref<128x896xbf16, #tpu.memory_space<vmem>>, vector<128x256xbf16>
    %cst_29 = arith.constant dense<0.000000e+00> : vector<8x256xf32>
    %80 = tpu.matmul %78, %79, %cst_29 {dimension_numbers = #tpu.dot_dimension_numbers<[1], [0], [0], [1], [0, 0, 1, 1], [], []>} : vector<8x128xbf16>, vector<128x256xbf16>, vector<8x256xf32> -> vector<8x256xf32>
    %c2 = arith.constant 2 : index
    %c0_30 = arith.constant 0 : index
    %81 = vector.load %arg3[%c2, %c0_30] : memref<8x256xf32, #tpu.memory_space<vmem>>, vector<1x256xf32>
    %c3 = arith.constant 3 : index
    %c0_31 = arith.constant 0 : index
    %82 = vector.load %arg3[%c3, %c0_31] : memref<8x256xf32, #tpu.memory_space<vmem>>, vector<1x256xf32>
    %83 = vector.extract_strided_slice %4 {offsets = [0, 256], sizes = [8, 256], strides = [1, 1]} : vector<8x512xf32> to vector<8x256xf32>
    %84 = arith.addf %83, %80 : vector<8x256xf32>
    %85 = vector.broadcast %69 : vector<8x1xf32> to vector<8x256xf32>
    %86 = vector.broadcast %81 : vector<1x256xf32> to vector<8x256xf32>
    %87 = arith.mulf %85, %86 : vector<8x256xf32>
    %88 = arith.subf %84, %87 : vector<8x256xf32>
    %89 = vector.broadcast %76 : vector<8x1xf32> to vector<8x256xf32>
    %90 = arith.mulf %89, %88 : vector<8x256xf32>
    %91 = vector.broadcast %82 : vector<1x256xf32> to vector<8x256xf32>
    %92 = arith.addf %90, %91 : vector<8x256xf32>
    %93 = vector.extract_strided_slice %92 {offsets = [0, 0], sizes = [8, 128], strides = [1, 1]} : vector<8x256xf32> to vector<8x128xf32>
    %94 = arith.addf %77, %93 : vector<8x128xf32>
    %c0_32 = arith.constant 0 : index
    %c0_33 = arith.constant 0 : index
    %95 = vector.load %arg4[%c0_32, %c0_33] : memref<8x256xf32, #tpu.memory_space<vmem>>, vector<8x128xf32>
    tpu.vector_store %arg4[%c0_32, %c0_33], %94 {strides = array<i32>} : memref<8x256xf32, #tpu.memory_space<vmem>>, vector<8x128xf32>,
    %96 = vector.extract_strided_slice %92 {offsets = [0, 128], sizes = [8, 128], strides = [1, 1]} : vector<8x256xf32> to vector<8x128xf32>
    %c0_34 = arith.constant 0 : index
    %c128_35 = arith.constant 128 : index
    %97 = vector.load %arg4[%c0_34, %c128_35] : memref<8x256xf32, #tpu.memory_space<vmem>>, vector<8x128xf32>
    tpu.vector_store %arg4[%c0_34, %c128_35], %96 {strides = array<i32>} : memref<8x256xf32, #tpu.memory_space<vmem>>, vector<8x128xf32>,
    return
  }
  func.func @transform_0(%arg0: i32) -> (i32, i32) {
    %c0_i32 = arith.constant 0 : i32
    %c0_i32_0 = arith.constant 0 : i32
    return %arg0, %c0_i32 : i32, i32
  }
  func.func @transform_1(%arg0: i32) -> (i32, i32) {
    %c0_i32 = arith.constant 0 : i32
    %c0_i32_0 = arith.constant 0 : i32
    %c0_i32_1 = arith.constant 0 : i32
    return %c0_i32, %c0_i32_0 : i32, i32
  }
  func.func @transform_2(%arg0: i32) -> (i32, i32) {
    %c0_i32 = arith.constant 0 : i32
    %c0_i32_0 = arith.constant 0 : i32
    %c0_i32_1 = arith.constant 0 : i32
    return %c0_i32, %c0_i32_0 : i32, i32
  }
  func.func @transform_3(%arg0: i32) -> (i32, i32) {
    %c0_i32 = arith.constant 0 : i32
    %c0_i32_0 = arith.constant 0 : i32
    return %arg0, %c0_i32 : i32, i32
  }
}

</mosaic_0001>

<bundles_post_ra>
// kernel: classification_head_forward.1
= control target key start
LH: loop header
LB: loop body
LE: loop exit
PB: predicated region body
PF: predicated region fallthrough
CT: control target
= control target key end

     0   :  { %8 = vsyncpa [#allocation3], 0  ;;  %s1016_s0 = inlined_call_operand.hbm [shape: f32[8,128], index: 0, kind: input, shape index: {}]   ;;  %s1017_s1 = inlined_call_operand.hbm [shape: bf16[128,896], index: 1, kind: input, shape index: {}]   ;;  %s1018_s2 = inlined_call_operand.hbm [shape: f32[8,256], index: 2, kind: input, shape index: {}]   ;;  %s1019_s3 = inlined_call_operand.vmem [shape: f32[8,256], index: 3, kind: output, shape index: {}]  }
   0x1   :  { %9 = vsyncpa [#allocation5], 0  ;;  %s920_s12 = smov [#allocation4]   ;;  %s850_s16 = scalar_lea.hbm %s1017_s1, 7168 }
   0x2   :  { %s25_s13 = sshll.u32 %s920_s12, 4  ;;  %p851_p0 = scmp.ne.s32.totalorder %s1017_s1, %s850_s16  ;;  %s26_s13 = int_to_ptr.vmem [resolvable:$true] %s25_s13 }
   0x3   :  { %p854_p1 = scmp.lt.u32.totalorder %s850_s16, %s1017_s1 }
   0x5   :  { %p856_p2 = pnand %p854_p1, %p851_p0 }
   0x7   :  { %859 = shalt.err (!%p856_p2)
}
   0x8   :  { %s860_s21 = scalar_lea.vmem %s26_s13, 7168  ;;  %p865_p4 = scmp.lt.s32.totalorder %s26_s13, %s26_s13 }
   0x9   :  { %p861_p3 = scmp.ne.s32.totalorder %s26_s13, %s860_s21  ;;  %p866_p5 = scmp.lt.s32.totalorder %s860_s21, %s860_s21 }
   0xb   :  { %p867_p6 = por %p866_p5, %p865_p4 }
   0xd   :  { %p868_p7 = pnand %p867_p6, %p861_p3 }
   0xf   :  { %871 = shalt.err (!%p868_p7)
}
  0x10   :  { %s921_s22 = smov 448   ;;  %s922_s23 = smov 28  }
  0x11   :  { %31 = dma.hbm_to_vmem [thread:$0]  %s1017_s1, 7168, %s26_s13, [#allocation5], %s921_s22, %s921_s22, %s922_s23  }
  0x12   :  { %s923_s26 = smov [#allocation2]   ;;  %s924_s28 = smov [#allocation6]  }
  0x13   :  { %s16_s27 = sshll.u32 %s923_s26, 4  ;;  %s38_s29 = sshll.u32 %s924_s28, 4  ;;  %s17_s27 = int_to_ptr.vmem [resolvable:$true] %s16_s27  ;;  %s39_s29 = int_to_ptr.vmem [resolvable:$true] %s38_s29 }
  0x14   :  { %s872_s5 = scalar_lea.hbm %s1016_s0, 128 }
  0x15   :  { %p873_p8 = scmp.ne.s32.totalorder %s1016_s0, %s872_s5  ;;  %p876_p9 = scmp.lt.u32.totalorder %s872_s5, %s1016_s0 }
  0x17   :  { %p878_p10 = pnand %p876_p9, %p873_p8 }
  0x19   :  { %881 = shalt.err (!%p878_p10)
}
  0x1a   :  { %s882_s1 = scalar_lea.vmem %s17_s27, 128  ;;  %p887_p12 = scmp.lt.s32.totalorder %s17_s27, %s17_s27 }
  0x1b   :  { %p883_p11 = scmp.ne.s32.totalorder %s17_s27, %s882_s1  ;;  %p888_p13 = scmp.lt.s32.totalorder %s882_s1, %s882_s1 }
  0x1d   :  { %p889_p0 = por %p888_p13, %p887_p12 }
  0x1f   :  { %p890_p1 = pnand %p889_p0, %p883_p11 }
  0x21   :  { %893 = shalt.err (!%p890_p1)
}
  0x22   :  { %19 = dma.hbm_to_vmem [thread:$0]  %s1016_s0, 128, %s17_s27, [#allocation3]  }
  0x23   :  { %s894_s14 = scalar_lea.hbm %s1018_s2, 256 }
  0x24   :  { %p895_p2 = scmp.ne.s32.totalorder %s1018_s2, %s894_s14  ;;  %p898_p3 = scmp.lt.u32.totalorder %s894_s14, %s1018_s2 }
  0x26   :  { %p900_p4 = pnand %p898_p3, %p895_p2 }
  0x28   :  { %903 = shalt.err (!%p900_p4)
}
  0x29   :  { %s904_s19 = scalar_lea.vmem %s39_s29, 256  ;;  %p909_p6 = scmp.lt.s32.totalorder %s39_s29, %s39_s29 }
  0x2a   :  { %p905_p5 = scmp.ne.s32.totalorder %s39_s29, %s904_s19  ;;  %p910_p7 = scmp.lt.s32.totalorder %s904_s19, %s904_s19 }
  0x2c   :  { %p911_p8 = por %p910_p7, %p909_p6 }
  0x2e   :  { %p912_p9 = pnand %p911_p8, %p905_p5 }
  0x30   :  { %915 = shalt.err (!%p912_p9)
}
  0x31   :  { %41 = dma.hbm_to_vmem [thread:$0]  %s1018_s2, 256, %s39_s29, [#allocation5]  }
  0x32   :  { %916 = dma.done.wait [#allocation3], 128  }
  0x33   :  { %917 = vsyncadd [#allocation3], 4294967168 }
  0x34   :  { %918 = dma.done.wait [#allocation5], 7424  }
  0x35   :  { %919 = vsyncadd [#allocation5], 4294959872  ;;  %v925_v0 = vmov 0   ;;  %v764_v1 = vld [vmem:[#allocation4 + $0x4] ss:$28 sps:$4 sm:$0xff]   ;;  %v52_v9 = vld [vmem:[#allocation2] sm:$0xff] }
  0x36   :  { %278 = vmatprep.mubr.bf16.mxu0 %v925_v0  ;;  %319 = vmatprep.mubr.bf16.mxu1 %v925_v0  ;;  %v766_v2 = vld [vmem:[#allocation4] ss:$28 sps:$4 sm:$0xff]   ;;  %v769_v4 = vld [vmem:[#allocation4 + $0x38] ss:$28 sps:$4 sm:$0xff]   ;;  %v772_v6 = vld [vmem:[#allocation4 + $0x70] ss:$28 sps:$4 sm:$0xff]   ;;  %v330_v11 = vmul.f32 %v52_v9, %v52_v9  ;;  %v986_v19 = vpack.c.bf16 %v52_v9, %v52_v9 }
  0x37   :  { %246 = vmatprep.subr.bf16.mxu0 %v764_v1  ;;  %v767_v3 = vld [vmem:[#allocation4 + $0x3c] ss:$28 sps:$4 sm:$0xff]   ;;  %v770_v5 = vld [vmem:[#allocation4 + $0x74] ss:$28 sps:$4 sm:$0xff]   ;;  %v773_v7 = vld [vmem:[#allocation4 + $0xac] ss:$28 sps:$4 sm:$0xff]   ;;  %328 = vadd.xlane.f32.xlu0 %v52_v9 }
  0x38   :  { %247 = vmatpush1.bf16.msra.mxu0 %v766_v2  ;;  %v775_v8 = vld [vmem:[#allocation4 + $0xa8] ss:$28 sps:$4 sm:$0xff]   ;;  %v778_v12 = vld [vmem:[#allocation4 + $0xe0] ss:$28 sps:$4 sm:$0xff]   ;;  %v781_v14 = vld [vmem:[#allocation4 + $0x118] ss:$28 sps:$4 sm:$0xff]  }
  0x39   :  { %248 = vmatprep.subr.bf16.mxu0 %v767_v3  ;;  %v776_v10 = vld [vmem:[#allocation4 + $0xe4] ss:$28 sps:$4 sm:$0xff]   ;;  %v779_v13 = vld [vmem:[#allocation4 + $0x11c] ss:$28 sps:$4 sm:$0xff]   ;;  %v782_v15 = vld [vmem:[#allocation4 + $0x154] ss:$28 sps:$4 sm:$0xff]  }
  0x3a   :  { %v784_v16 = vld [vmem:[#allocation4 + $0x150] ss:$28 sps:$4 sm:$0xff]   ;;  %v787_v18 = vld [vmem:[#allocation4 + $0x188] ss:$28 sps:$4 sm:$0xff]   ;;  %v926_v21 = vmov 0.0   ;;  %vm927_vm0 = vmmov 0  }
  0x3b   :  { %331 = vadd.xlane.f32.xlu0 %v330_v11  ;;  %v785_v17 = vld [vmem:[#allocation4 + $0x18c] ss:$28 sps:$4 sm:$0xff]   ;;  %v790_v23 = vld [vmem:[#allocation4 + $0x80] ss:$28 sps:$4 sm:$0xff]   ;;  %v791_v24 = vld [vmem:[#allocation4 + $0xb8] ss:$28 sps:$4 sm:$0xff]  }
  0x3c   :  { %249 = vmatpush1.bf16.msra.mxu0 %v769_v4  ;;  %v788_v20 = vld [vmem:[#allocation4 + $0x10] ss:$28 sps:$4 sm:$0xff]   ;;  %v789_v22 = vld [vmem:[#allocation4 + $0x48] ss:$28 sps:$4 sm:$0xff]   ;;  %v794_v27 = vld [vmem:[#allocation4 + $0x160] ss:$28 sps:$4 sm:$0xff]  }
  0x3d   :  { %250 = vmatprep.subr.bf16.mxu0 %v770_v5  ;;  %v792_v25 = vld [vmem:[#allocation4 + $0xf0] ss:$28 sps:$4 sm:$0xff]   ;;  %v793_v26 = vld [vmem:[#allocation4 + $0x128] ss:$28 sps:$4 sm:$0xff]   ;;  %v795_v28 = vld [vmem:[#allocation4 + $0x198] ss:$28 sps:$4 sm:$0xff]  }
  0x3e   :  { %v339_v36 = vld [vmem:[#allocation6] ss:$0 sm:$0xff]  ;;  %v340_v42 = vld [vmem:[#allocation6 + $0x1] ss:$0 sm:$0xff]  ;;  %v796_v49 = vld [vmem:[#allocation4 + $0xc] ss:$28 sps:$4 sm:$0xff]  }
  0x3f   :  { %v798_v50 = vld [vmem:[#allocation4 + $0x8] ss:$28 sps:$4 sm:$0xff]   ;;  %287 = vmatprep.subr.bf16.mxu1 %v796_v49  ;;  %v801_v52 = vld [vmem:[#allocation4 + $0x40] ss:$28 sps:$4 sm:$0xff]   ;;  %v804_v54 = vld [vmem:[#allocation4 + $0x78] ss:$28 sps:$4 sm:$0xff]   ;;  %v629_v49 = vlaneseq }
  0x40   :  { %251 = vmatpush1.bf16.msra.mxu0 %v772_v6  ;;  %v799_v51 = vld [vmem:[#allocation4 + $0x44] ss:$28 sps:$4 sm:$0xff]   ;;  %288 = vmatpush1.bf16.msra.mxu1 %v798_v50  ;;  %v802_v53 = vld [vmem:[#allocation4 + $0x7c] ss:$28 sps:$4 sm:$0xff]   ;;  %v805_v55 = vld [vmem:[#allocation4 + $0xb4] ss:$28 sps:$4 sm:$0xff]  }
  0x41   :  { %252 = vmatprep.subr.bf16.mxu0 %v773_v7  ;;  %289 = vmatprep.subr.bf16.mxu1 %v799_v51  ;;  %v807_v56 = vld [vmem:[#allocation4 + $0xb0] ss:$28 sps:$4 sm:$0xff]   ;;  %v810_v58 = vld [vmem:[#allocation4 + $0xe8] ss:$28 sps:$4 sm:$0xff]   ;;  %v813_v60 = vld [vmem:[#allocation4 + $0x120] ss:$28 sps:$4 sm:$0xff]  }
  0x42   :  { %v808_v57 = vld [vmem:[#allocation4 + $0xec] ss:$28 sps:$4 sm:$0xff]   ;;  %v811_v59 = vld [vmem:[#allocation4 + $0x124] ss:$28 sps:$4 sm:$0xff]   ;;  %v814_v61 = vld [vmem:[#allocation4 + $0x15c] ss:$28 sps:$4 sm:$0xff]  }
  0x43   :  { %v816_v62 = vld [vmem:[#allocation4 + $0x158] ss:$28 sps:$4 sm:$0xff]   ;;  %v819_v1 = vld [vmem:[#allocation4 + $0x190] ss:$28 sps:$4 sm:$0xff]   ;;  %v828_v6 = vld [vmem:[#allocation4 + $0x88] ss:$28 sps:$4 sm:$0xff]  }
  0x44   :  { %253 = vmatpush1.bf16.msra.mxu0 %v775_v8  ;;  %290 = vmatpush1.bf16.msra.mxu1 %v801_v52  ;;  %v817_v63 = vld [vmem:[#allocation4 + $0x194] ss:$28 sps:$4 sm:$0xff]   ;;  %v823_v5 = vld [vmem:[#allocation4 + $0x4c] ss:$28 sps:$4 sm:$0xff]   ;;  %v826_v7 = vld [vmem:[#allocation4 + $0x84] ss:$28 sps:$4 sm:$0xff]  }
  0x45   :  { %254 = vmatprep.subr.bf16.mxu0 %v776_v10  ;;  %291 = vmatprep.subr.bf16.mxu1 %v802_v53  ;;  %v822_v2 = vld [vmem:[#allocation4 + $0x18] ss:$28 sps:$4 sm:$0xff]   ;;  %v825_v4 = vld [vmem:[#allocation4 + $0x50] ss:$28 sps:$4 sm:$0xff]   ;;  %v831_v8 = vld [vmem:[#allocation4 + $0xc0] ss:$28 sps:$4 sm:$0xff]  }
  0x46   :  { %v820_v3 = vld [vmem:[#allocation4 + $0x14] ss:$28 sps:$4 sm:$0xff]   ;;  %v829_v9 = vld [vmem:[#allocation4 + $0xbc] ss:$28 sps:$4 sm:$0xff]   ;;  %v630_v51 = vshrl.u32 %v629_v49, 7 }
  0x47   :  { %v834_v10 = vld [vmem:[#allocation4 + $0xf8] ss:$28 sps:$4 sm:$0xff]  }
  0x48   :  { %255 = vmatpush1.bf16.msra.mxu0 %v778_v12  ;;  %292 = vmatpush1.bf16.msra.mxu1 %v804_v54  ;;  %v832_v11 = vld [vmem:[#allocation4 + $0xf4] ss:$28 sps:$4 sm:$0xff]   ;;  %v631_v53 = vsub.s32 0, %v630_v51  ;;  %v623_v54 = vld [vmem:[#allocation6 + $0x2] ss:$8 sm:$0x3] }
  0x49   :  { %256 = vmatprep.subr.bf16.mxu0 %v779_v13  ;;  %293 = vmatprep.subr.bf16.mxu1 %v805_v55  ;;  %v837_v12 = vld [vmem:[#allocation4 + $0x130] ss:$28 sps:$4 sm:$0xff]   ;;  %v635_v55 = vsub.s32 1, %v630_v51 }
  0x4a   :  { %v835_v13 = vld [vmem:[#allocation4 + $0x12c] ss:$28 sps:$4 sm:$0xff]  }
  0x4c   :  { %257 = vmatpush1.bf16.msra.mxu0 %v781_v14  ;;  %294 = vmatpush1.bf16.msra.mxu1 %v807_v56  ;;  %v840_v14 = vld [vmem:[#allocation4 + $0x168] ss:$28 sps:$4 sm:$0xff]   ;;  %v636_v56 = vrot.slane %v623_v54, %v635_v55 }
  0x4d   :  { %258 = vmatprep.subr.bf16.mxu0 %v782_v15  ;;  %295 = vmatprep.subr.bf16.mxu1 %v808_v57  ;;  %v843_v15 = vld [vmem:[#allocation4 + $0x1a0] ss:$28 sps:$4 sm:$0xff]  }
  0x4e   :  { %v625_v57 = vld [vmem:[#allocation6 + $0x3] ss:$8 sm:$0x3] }
  0x50   :  { %259 = vmatpush1.bf16.msra.mxu0 %v784_v16  ;;  %296 = vmatpush1.bf16.msra.mxu1 %v810_v58  ;;  %v841_v16 = vld [vmem:[#allocation4 + $0x19c] ss:$28 sps:$4 sm:$0xff]  }
  0x51   :  { %260 = vmatprep.subr.bf16.mxu0 %v785_v17  ;;  %297 = vmatprep.subr.bf16.mxu1 %v811_v59 }
  0x54   :  { %261 = vmatpush1.bf16.msra.mxu0 %v787_v18  ;;  %298 = vmatpush1.bf16.msra.mxu1 %v813_v60 }
  0x55   :  { %732 = vmatprep.subr.bf16.mxu0 %v926_v21  ;;  %299 = vmatprep.subr.bf16.mxu1 %v814_v61 }
  0x57   :  { %279 = vmatmul.mubr.bf16.vlgmr.msra.gmra.mrb[0].mxu0 %v986_v19 }
  0x58   :  { %733 = vmatpush3.bf16.msra.mxu0 %v788_v20  ;;  %748 = vmatprep.mubr.msk.bf16.mxu0 %vm927_vm0, %v926_v21 }
  0x59   :  { %734 = vmatprep.subr.bf16.mxu0 %v926_v21  ;;  %300 = vmatpush1.bf16.msra.mxu1 %v816_v62  ;;  %v649_v62 = vrot.slane %v625_v57, %v631_v53 }
  0x5a   :  { %301 = vmatprep.subr.bf16.mxu1 %v817_v63 }
  0x5c   :  { %735 = vmatpush3.bf16.msra.mxu0 %v789_v22 }
  0x5d   :  { %736 = vmatprep.subr.bf16.mxu0 %v926_v21  ;;  %302 = vmatpush1.bf16.msra.mxu1 %v819_v1 }
  0x5e   :  { %581 = vmatprep.subr.bf16.mxu1 %v822_v2 }
  0x60   :  { %737 = vmatpush3.bf16.msra.mxu0 %v790_v23  ;;  %320 = vmatmul.mubr.bf16.vlgmr.msra.gmra.mrb[0].mxu1 %v986_v19 }
  0x61   :  { %738 = vmatprep.subr.bf16.mxu0 %v926_v21  ;;  %582 = vmatpush1.bf16.msra.mxu1 %v820_v3  ;;  %v653_v3 = vrot.slane %v625_v57, %v635_v55 }
  0x62   :  { %613 = vmatprep.mubr.bf16.mxu1 %v925_v0  ;;  %583 = vmatprep.subr.bf16.mxu1 %v825_v4  ;;  %v838_v0 = vld [vmem:[#allocation4 + $0x164] ss:$28 sps:$4 sm:$0xff]  }
  0x64   :  { %739 = vmatpush3.bf16.msra.mxu0 %v791_v24 }
  0x65   :  { %740 = vmatprep.subr.bf16.mxu0 %v926_v21  ;;  %584 = vmatpush1.bf16.msra.mxu1 %v823_v5 }
  0x66   :  { %585 = vmatprep.subr.bf16.mxu1 %v828_v6 }
  0x68   :  { %741 = vmatpush3.bf16.msra.mxu0 %v792_v25 }
  0x69   :  { %742 = vmatprep.subr.bf16.mxu0 %v926_v21  ;;  %586 = vmatpush1.bf16.msra.mxu1 %v826_v7 }
  0x6a   :  { %587 = vmatprep.subr.bf16.mxu1 %v831_v8 }
  0x6c   :  { %743 = vmatpush3.bf16.msra.mxu0 %v793_v26  ;;  %v463_v26 = vld [vmem:[#allocation6 + $0x8] ss:$0 sm:$0xff] }
  0x6d   :  { %744 = vmatprep.subr.bf16.mxu0 %v926_v21  ;;  %588 = vmatpush1.bf16.msra.mxu1 %v829_v9 }
  0x6e   :  { %589 = vmatprep.subr.bf16.mxu1 %v834_v10 }
  0x70   :  { %745 = vmatpush3.bf16.msra.mxu0 %v794_v27 }
  0x71   :  { %746 = vmatprep.subr.bf16.mxu0 %v926_v21  ;;  %590 = vmatpush1.bf16.msra.mxu1 %v832_v11 }
  0x72   :  { %591 = vmatprep.subr.bf16.mxu1 %v837_v12 }
  0x74   :  { %747 = vmatpush3.bf16.msra.mxu0 %v795_v28 }
  0x75   :  { %592 = vmatpush1.bf16.msra.mxu1 %v835_v13 }
  0x76   :  { %593 = vmatprep.subr.bf16.mxu1 %v840_v14 }
  0x79   :  { %594 = vmatpush1.bf16.msra.mxu1 %v838_v0 }
  0x7a   :  { %595 = vmatprep.subr.bf16.mxu1 %v843_v15 }
  0x7d   :  { %596 = vmatpush1.bf16.msra.mxu1 %v841_v16 }
  0xc4   :  { %v989_v29 = vpop.xlane.xlu0 %328 }
  0xc5   :  { %v333_v30 = vmul.f32 0.0078125, %v989_v29 }
  0xc7   :  { %v335_v32 = vmul.f32 %v333_v30, %v333_v30  ;;  %v341_v37 = vmul.f32 %v339_v36, %v333_v30 }
  0xc8   :  { %v992_v31 = vpop.xlane.xlu0 %331 }
  0xc9   :  { %v334_v33 = vmul.f32 0.0078125, %v992_v31 }
  0xcb   :  { %v336_v34 = vsub.f32 %v334_v33, %v335_v32 }
  0xcd   :  { %v337_v35 = vadd.f32 1e-05, %v336_v34 }
  0xcf   :  { %844 = vrsqrt.f32 %v337_v35 }
  0xd9   :  { %v845_v41 = vpop.eup %844 }
 0x12a   :  { %v280_v38 = vpop.f32.mrb[0].mxu0 }
 0x12b   :  { %v342_v39 = vsub.f32 %v280_v38, %v341_v37  ;;  %v995_v40 = vpop.f32.mrb[1].mxu0  ;;  %v464_v37 = vld [vmem:[#allocation6 + $0x9] ss:$0 sm:$0xff] }
 0x12c   :  { %v284_v43 = vpop.f32.mrb[2].mxu0 }
 0x12d   :  { %v343_v44 = vmul.f32 %v845_v41, %v342_v39  ;;  %v285_v45 = vpop.f32.mrb[3].mxu0 }
 0x12f   :  { %v997_v46 = vadd.f32 %v343_v44, %v340_v42 }
 0x131   :  { %345 = vadd.xlane.f32.xlu1 %v997_v46  ;;  %v358_v47 = vpack.c.bf16 %v997_v46, %v997_v46  ;;  %v348_v48 = vmul.f32 %v997_v46, %v997_v46 }
 0x133   :  { %749 = vmatmul.mubr.bf16.vlgmr.msra.gmra.mrb[4].mxu0 %v358_v47 }
 0x135   :  { %349 = vadd.xlane.f32.xlu1 %v348_v48 }
 0x1be   :  { %v346_v17 = vpop.xlane.xlu1 %345 }
 0x1bf   :  { %v347_v19 = vadd.f32 %v346_v17, %v989_v29 }
 0x1c1   :  { %v352_v21 = vmul.f32 0.007518797, %v347_v19 }
 0x1c2   :  { %v350_v18 = vpop.xlane.xlu1 %349 }
 0x1c3   :  { %v351_v20 = vadd.f32 %v350_v18, %v992_v31  ;;  %v354_v23 = vmul.f32 %v352_v21, %v352_v21  ;;  %v466_v30 = vmul.f32 %v463_v26, %v352_v21 }
 0x1c5   :  { %v353_v22 = vmul.f32 0.007518797, %v351_v20 }
 0x1c7   :  { %v355_v24 = vsub.f32 %v353_v22, %v354_v23 }
 0x1c9   :  { %v356_v25 = vadd.f32 1e-05, %v355_v24 }
 0x1cb   :  { %846 = vrsqrt.f32 %v356_v25 }
 0x1d5   :  { %v847_v36 = vpop.eup %846 }
 0x206   :  { %v457_v27 = vpop.f32.mrb[4].mxu0 }
 0x207   :  { %v465_v28 = vadd.f32 %v457_v27, %v995_v40  ;;  %v750_v32 = vpop.f32.mrb[5].mxu0 }
 0x208   :  { %v460_v33 = vpop.f32.mrb[6].mxu0 }
 0x209   :  { %v467_v34 = vsub.f32 %v465_v28, %v466_v30  ;;  %v751_v35 = vpop.f32.mrb[7].mxu0 }
 0x20b   :  { %v468_v29 = vmul.f32 %v847_v36, %v467_v34 }
 0x20d   :  { %v469_v38 = vadd.f32 %v468_v29, %v464_v37 }
 0x20f   :  { %470 = vadd.xlane.f32.xlu0 %v469_v38  ;;  %v483_v31 = vadd.f32 %v469_v38, %v997_v46  ;;  %v473_v39 = vmul.f32 %v469_v38, %v469_v38  ;;  %v632_v46 = vrot.slane %v623_v54, %v631_v53 }
 0x211   :  { %474 = vadd.xlane.f32.xlu1 %v473_v39  ;;  %v484_v41 = vpack.c.bf16 %v483_v31, %v483_v31 }
 0x213   :  { %614 = vmatmul.mubr.bf16.vlgmr.msra.gmra.mrb[0].mxu1 %v484_v41 }
 0x29c   :  { %v471_v42 = vpop.xlane.xlu0 %470 }
 0x29d   :  { %v472_v43 = vadd.f32 %v471_v42, %v347_v19 }
 0x29e   :  { %v475_v44 = vpop.xlane.xlu1 %474 }
 0x29f   :  { %v477_v40 = vmul.f32 0.0056497175, %v472_v43  ;;  %v476_v45 = vadd.f32 %v475_v44, %v351_v20 }
 0x2a1   :  { %v479_v47 = vmul.f32 %v477_v40, %v477_v40  ;;  %v478_v48 = vmul.f32 0.0056497175, %v476_v45  ;;  %v639_v58 = vmul.f32 %v632_v46, %v477_v40  ;;  %v640_v60 = vmul.f32 %v636_v56, %v477_v40 }
 0x2a3   :  { %v480_v50 = vsub.f32 %v478_v48, %v479_v47 }
 0x2a5   :  { %v481_v52 = vadd.f32 1e-05, %v480_v50 }
 0x2a7   :  { %848 = vrsqrt.f32 %v481_v52 }
 0x2b1   :  { %v849_v1 = vpop.eup %848 }
 0x2e6   :  { %v615_v59 = vpop.f32.mrb[0].mxu1 }
 0x2e7   :  { %v641_v61 = vsub.f32 %v615_v59, %v639_v58  ;;  %v617_v63 = vpop.f32.mrb[1].mxu1 }
 0x2e8   :  { %v642_v2 = vsub.f32 %v617_v63, %v640_v60  ;;  %v619_v4 = vpop.f32.mrb[2].mxu1 }
 0x2e9   :  { %v643_v5 = vmul.f32 %v849_v1, %v641_v61  ;;  %v620_v6 = vpop.f32.mrb[3].mxu1 }
 0x2ea   :  { %v644_v7 = vmul.f32 %v849_v1, %v642_v2 }
 0x2eb   :  { %v656_v8 = vadd.f32 %v649_v62, %v643_v5 }
 0x2ec   :  { %v657_v9 = vadd.f32 %v653_v3, %v644_v7 }
 0x2ed   :  { %v658_v10 = vadd.f32 %v656_v8, %v483_v31 }
 0x2ee   :  { %660 = vst [vmem:[%s1019_s3 + $0x8] sm:$0xff] %v657_v9 }
 0x2ef   :  { %659 = vst [vmem:[%s1019_s3] sm:$0xff] %v658_v10 }
 0x2f0   :  { %665 = vsyncpa [#allocation3], 1 }
 0x2f1   :  { %666 = vsyncpa [#allocation5], 1 }

</bundles_post_ra>
